<compile_context>
chip_gen: v7x
topology: tpu7x:2x2x1
jax: 0.10.0
libtpu: 0.0.40
codegen_flags: <defaults>
</compile_context>

<pallas_src>
import functools

import jax
import jax.numpy as jnp
from jax import lax
from jax.experimental import pallas as pl
from jax.experimental.pallas import tpu as pltpu


def _round_up(x, m):
    return ((x + m - 1) // m) * m


def _conv1d_tap_kernel(x_ref, w_ref, b_ref, o_ref, *, K, dilation):
    """One batch element: dense (stride-1) Conv1d as K accumulated MXU matmuls.

    x_ref: (C_in, L_in_total)   padded signal (bf16/f32), NCL lane layout
    w_ref: (K, C_out, C_in)     weights, tap-major, VMEM-resident
    b_ref: (C_out, 1)           bias, f32, VMEM-resident
    o_ref: (C_out, L_out_pad)   output block, lane-dense (L_out_pad % 128 == 0)
    """
    l_out = o_ref.shape[1]
    acc = jnp.zeros(o_ref.shape, jnp.float32)
    for t in range(K):                        # K is small & static -> unrolled
        lo = t * dilation                     # static tap offset -> static slice
        x_t = x_ref[:, lo:lo + l_out]         # (C_in, L_out_pad) tap-shifted view
        acc = acc + jnp.dot(w_ref[t], x_t, preferred_element_type=jnp.float32)
    o_ref[...] = (acc + b_ref[...]).astype(o_ref.dtype)


def conv_norm_forward(signal, weight, bias=None, *, stride=1, padding=None,
                      dilation=1, mxu_dtype=jnp.bfloat16):
    """Equivalent of ConvNorm.forward(signal).

    signal: (B, C_in, L)  -- PyTorch NCL layout
    weight: (C_out, C_in, K)
    bias:   (C_out,) or None
    returns (B, C_out, L_out) in NCL (same dtype as `signal`)
    """
    B, C_in, L = signal.shape
    C_out, _, K = weight.shape
    if padding is None:
        assert K % 2 == 1
        padding = int(dilation * (K - 1) / 2)

    # Dense (stride-1) output length; stride>1 is handled by subsampling the
    # dense result afterwards (speechsplit's ConvNorm always uses stride=1).
    L1 = L + 2 * padding - dilation * (K - 1)
    assert L1 > 0, "kernel/dilation too large for input length"
    L_out = (L1 - 1) // stride + 1

    LANE = 128
    L_out_pad = _round_up(L1, LANE)                     # lane-dense output width
    L_in_total = L_out_pad + dilation * (K - 1)         # covers every tap slice
    pad_right = L_in_total - L - padding                # >= padding >= 0

    compute_dtype = signal.dtype if mxu_dtype is None else mxu_dtype
    out_dtype = signal.dtype

    # --- layout plumbing (cheap, no K-fold blowup) -------------------------
    x_pad = jnp.pad(signal, ((0, 0), (0, 0), (padding, pad_right)))
    x_pad = x_pad.astype(compute_dtype)                 # (B, C_in, L_in_total)
    w_k = jnp.transpose(weight, (2, 0, 1)).astype(compute_dtype)  # (K, C_out, C_in)
    if bias is None:
        bias = jnp.zeros((C_out,), jnp.float32)
    b_col = bias.astype(jnp.float32).reshape(C_out, 1)

    # --- VMEM budget (double-buffered x/out blocks, resident weight/bias) --
    in_isz = jnp.dtype(compute_dtype).itemsize
    out_isz = jnp.dtype(out_dtype).itemsize
    vmem_need = (2 * C_in * L_in_total * in_isz
                 + 2 * C_out * L_out_pad * out_isz
                 + 2 * K * C_out * C_in * in_isz
                 + 2 * C_out * 4)
    vmem_limit = int(min(64 * 2 ** 20, max(32 * 2 ** 20, 2 * vmem_need)))

    kernel = functools.partial(_conv1d_tap_kernel, K=K, dilation=dilation)

    out = pl.pallas_call(
        kernel,
        out_shape=jax.ShapeDtypeStruct((B, C_out, L_out_pad), out_dtype),
        grid=(B,),
        in_specs=[
            # Whole padded signal for this batch element (full last-two dims).
            pl.BlockSpec((None, C_in, L_in_total), lambda b: (b, 0, 0)),
            # Weight & bias: constant index_map -> copied into VMEM once.
            pl.BlockSpec((K, C_out, C_in), lambda b: (0, 0, 0)),
            pl.BlockSpec((C_out, 1), lambda b: (0, 0)),
        ],
        out_specs=pl.BlockSpec((None, C_out, L_out_pad), lambda b: (b, 0, 0)),
        compiler_params=pltpu.CompilerParams(
            dimension_semantics=("parallel",),
            vmem_limit_bytes=vmem_limit,
        ),
    )(x_pad, w_k, b_col)

    out = out[:, :, :L1]                       # drop lane padding
    if stride > 1:
        # TODO(synk): fold stride into the kernel (strided pl.ds) instead of
        # computing the dense conv and subsampling; unused by speechsplit.
        out = out[:, :, ::stride]
    return out


if __name__ == "__main__":
    # ConvNorm(in_channels=4, out_channels=8, kernel_size=3) -> "same" padding=1
    B, C_in, C_out, L, K = 2, 4, 8, 16, 3
    stride, dilation = 1, 1
    padding = int(dilation * (K - 1) / 2)

    key = jax.random.PRNGKey(0)
    kx, kw, kb = jax.random.split(key, 3)
    x = jax.random.normal(kx, (B, C_in, L), dtype=jnp.float32)
    weight = jax.random.normal(kw, (C_out, C_in, K), dtype=jnp.float32) * 0.1
    bias = jax.random.normal(kb, (C_out,), dtype=jnp.float32) * 0.1

    y = conv_norm_forward(x, weight, bias, stride=stride,
                          padding=padding, dilation=dilation)
    y = jax.block_until_ready(y)

    # Reference: XLA conv (cross-correlation, same as torch Conv1d) on the
    # same bf16-rounded operands the MXU sees, accumulated in f32.
    xq = x.astype(jnp.bfloat16).astype(jnp.float32)
    wq = weight.astype(jnp.bfloat16).astype(jnp.float32)
    ref = lax.conv_general_dilated(
        xq, wq, window_strides=(stride,), padding=[(padding, padding)],
        rhs_dilation=(dilation,), dimension_numbers=("NCH", "OIH", "NCH"),
        preferred_element_type=jnp.float32,
    ) + bias[None, :, None]

    assert y.shape == (B, C_out, L), y.shape
    assert jnp.allclose(y, ref, atol=1e-3, rtol=1e-3), "mismatch vs XLA conv reference"
    print("KERNEL_OK")
</pallas_src>

<mosaic_0001>
module attributes {stable_mosaic.version = 11 : i64} {
  func.func @_conv1d_tap_kernel(%arg0: i32, %arg1: memref<1x4x130xbf16, #tpu.memory_space<vmem>>, %arg2: memref<3x8x4xbf16, #tpu.memory_space<vmem>>, %arg3: memref<8x1xf32, #tpu.memory_space<vmem>>, %arg4: memref<1x8x128xf32, #tpu.memory_space<vmem>>) attributes {dimension_semantics = [#tpu.dimension_semantics<parallel>], iteration_bounds = array<i64: 2>, scalar_prefetch = 0 : i64, scratch_operands = 0 : i64, tpu.core_type = #tpu.core_type<tc>, window_params = [{transform_indices = @transform_0, window_bounds = array<i64: 1, 4, 130>}, {pipeline_mode = #tpu.pipeline_mode<synchronous>, transform_indices = @transform_1, window_bounds = array<i64: 3, 8, 4>}, {pipeline_mode = #tpu.pipeline_mode<synchronous>, transform_indices = @transform_2, window_bounds = array<i64: 8, 1>}, {transform_indices = @transform_3, window_bounds = array<i64: 1, 8, 128>}]} {
    %cst = arith.constant 0.000000e+00 : f32
    %0 = vector.broadcast %cst : f32 to vector<8x128xf32>
    %c0 = arith.constant 0 : index
    %c0_0 = arith.constant 0 : index
    %c0_1 = arith.constant 0 : index
    %1 = vector.load %arg1[%c0, %c0_0, %c0_1] : memref<1x4x130xbf16, #tpu.memory_space<vmem>>, vector<1x4x128xbf16>
    %2 = vector.shape_cast %1 : vector<1x4x128xbf16> to vector<4x128xbf16>
    %c0_2 = arith.constant 0 : index
    %c0_3 = arith.constant 0 : index
    %c0_4 = arith.constant 0 : index
    %3 = vector.load %arg2[%c0_2, %c0_3, %c0_4] : memref<3x8x4xbf16, #tpu.memory_space<vmem>>, vector<1x8x4xbf16>
    %4 = vector.shape_cast %3 : vector<1x8x4xbf16> to vector<8x4xbf16>
    %cst_5 = arith.constant dense<0.000000e+00> : vector<8x128xf32>
    %5 = tpu.matmul %4, %2, %cst_5 {dimension_numbers = #tpu.dot_dimension_numbers<[1], [0], [0], [1], [0, 0, 1, 1], [], []>} : vector<8x4xbf16>, vector<4x128xbf16>, vector<8x128xf32> -> vector<8x128xf32>
    %6 = arith.addf %0, %5 : vector<8x128xf32>
    %c0_6 = arith.constant 0 : index
    %c0_7 = arith.constant 0 : index
    %c1 = arith.constant 1 : index
    %7 = vector.load %arg1[%c0_6, %c0_7, %c1] : memref<1x4x130xbf16, #tpu.memory_space<vmem>>, vector<1x4x128xbf16>
    %8 = vector.shape_cast %7 : vector<1x4x128xbf16> to vector<4x128xbf16>
    %c1_8 = arith.constant 1 : index
    %c0_9 = arith.constant 0 : index
    %c0_10 = arith.constant 0 : index
    %9 = vector.load %arg2[%c1_8, %c0_9, %c0_10] : memref<3x8x4xbf16, #tpu.memory_space<vmem>>, vector<1x8x4xbf16>
    %10 = vector.shape_cast %9 : vector<1x8x4xbf16> to vector<8x4xbf16>
    %cst_11 = arith.constant dense<0.000000e+00> : vector<8x128xf32>
    %11 = tpu.matmul %10, %8, %cst_11 {dimension_numbers = #tpu.dot_dimension_numbers<[1], [0], [0], [1], [0, 0, 1, 1], [], []>} : vector<8x4xbf16>, vector<4x128xbf16>, vector<8x128xf32> -> vector<8x128xf32>
    %12 = arith.addf %6, %11 : vector<8x128xf32>
    %c0_12 = arith.constant 0 : index
    %c0_13 = arith.constant 0 : index
    %c2 = arith.constant 2 : index
    %13 = vector.load %arg1[%c0_12, %c0_13, %c2] : memref<1x4x130xbf16, #tpu.memory_space<vmem>>, vector<1x4x128xbf16>
    %14 = vector.shape_cast %13 : vector<1x4x128xbf16> to vector<4x128xbf16>
    %c2_14 = arith.constant 2 : index
    %c0_15 = arith.constant 0 : index
    %c0_16 = arith.constant 0 : index
    %15 = vector.load %arg2[%c2_14, %c0_15, %c0_16] : memref<3x8x4xbf16, #tpu.memory_space<vmem>>, vector<1x8x4xbf16>
    %16 = vector.shape_cast %15 : vector<1x8x4xbf16> to vector<8x4xbf16>
    %cst_17 = arith.constant dense<0.000000e+00> : vector<8x128xf32>
    %17 = tpu.matmul %16, %14, %cst_17 {dimension_numbers = #tpu.dot_dimension_numbers<[1], [0], [0], [1], [0, 0, 1, 1], [], []>} : vector<8x4xbf16>, vector<4x128xbf16>, vector<8x128xf32> -> vector<8x128xf32>
    %18 = arith.addf %12, %17 : vector<8x128xf32>
    %c0_18 = arith.constant 0 : index
    %c0_19 = arith.constant 0 : index
    %19 = vector.load %arg3[%c0_18, %c0_19] : memref<8x1xf32, #tpu.memory_space<vmem>>, vector<8x1xf32>
    %20 = vector.broadcast %19 : vector<8x1xf32> to vector<8x128xf32>
    %21 = arith.addf %18, %20 : vector<8x128xf32>
    %c0_20 = arith.constant 0 : index
    %c0_21 = arith.constant 0 : index
    %c0_22 = arith.constant 0 : index
    %22 = vector.load %arg4[%c0_20, %c0_21, %c0_22] : memref<1x8x128xf32, #tpu.memory_space<vmem>>, vector<1x8x128xf32>
    %23 = vector.shape_cast %22 : vector<1x8x128xf32> to vector<8x128xf32>
    %24 = vector.shape_cast %21 : vector<8x128xf32> to vector<1x8x128xf32>
    tpu.vector_store %arg4[%c0_20, %c0_21, %c0_22], %24 {strides = array<i32>} : memref<1x8x128xf32, #tpu.memory_space<vmem>>, vector<1x8x128xf32>,
    return
  }
  func.func @transform_0(%arg0: i32) -> (i32, i32, i32) {
    %c0_i32 = arith.constant 0 : i32
    %c0_i32_0 = arith.constant 0 : i32
    %c0_i32_1 = arith.constant 0 : i32
    return %arg0, %c0_i32, %c0_i32_0 : i32, i32, i32
  }
  func.func @transform_1(%arg0: i32) -> (i32, i32, i32) {
    %c0_i32 = arith.constant 0 : i32
    %c0_i32_0 = arith.constant 0 : i32
    %c0_i32_1 = arith.constant 0 : i32
    %c0_i32_2 = arith.constant 0 : i32
    return %c0_i32, %c0_i32_0, %c0_i32_1 : i32, i32, i32
  }
  func.func @transform_2(%arg0: i32) -> (i32, i32) {
    %c0_i32 = arith.constant 0 : i32
    %c0_i32_0 = arith.constant 0 : i32
    %c0_i32_1 = arith.constant 0 : i32
    return %c0_i32, %c0_i32_0 : i32, i32
  }
  func.func @transform_3(%arg0: i32) -> (i32, i32, i32) {
    %c0_i32 = arith.constant 0 : i32
    %c0_i32_0 = arith.constant 0 : i32
    %c0_i32_1 = arith.constant 0 : i32
    return %arg0, %c0_i32, %c0_i32_0 : i32, i32, i32
  }
}

</mosaic_0001>

<bundles_post_ra>
// kernel: tpu_custom_call.1
= control target key start
LH: loop header
LB: loop body
LE: loop exit
PB: predicated region body
PF: predicated region fallthrough
CT: control target
= control target key end

     0   :  { %8 = vsyncpa [#allocation3], 0  ;;  %s729_s0 = inlined_call_operand.vmem [shape: bf16[2,4,130], index: 0, kind: input, shape index: {}]   ;;  %s730_s1 = inlined_call_operand.vmem [shape: bf16[3,8,4], index: 1, kind: input, shape index: {}]   ;;  %s731_s2 = inlined_call_operand.vmem [shape: f32[8,1], index: 2, kind: input, shape index: {}]   ;;  %s732_s3 = inlined_call_operand.hbm [shape: f32[2,8,128], index: 3, kind: output, shape index: {}]  }
   0x1   :  { %10 = vsyncpa [#allocation3 + $0x1], 0  ;;  %s608_s12 = smov 0   ;;  %s610_s13 = smov 0  }
   0x2   :  { %s612_s14 = smov 0   ;;  %s614_s15 = smov 0  }
   0x3 LB: > { %s629_s16 = sadd.s32 4294967295, %s580_s15   ;;  %s430_s17 = sadd.s32 4294967294, %s580_s15   ;;  %s580_s15 = sphi %s614_s15, %s738_s15   ;;  %s576_s14 = sphi %s612_s14, %s737_s14   ;;  %s572_s13 = sphi %s610_s13, %s736_s13   ;;  %s568_s12 = sphi %s608_s12, %s735_s12  }
   0x4   : > { %s633_s18 = sadd.s32 1, %s580_s15   ;;  %s91_s19 = sadd.s32 1, %s576_s14 }
   0x5   : > { %s88_s20 = ssub.s32 %s580_s15, %s633_s18  ;;  %p101_p0 = scmp.ne.s32.totalorder %s576_s14, %s572_s13 }
   0x6   : > { %p89_p1 = scmp.eq.s32.totalorder %s88_s20, 0  ;;  %p102_p2 = scmp.eq.s32.totalorder %s629_s16, 1 }
   0x7   : > { %p107_p3 = scmp.ne.s32.totalorder %s572_s13, %s568_s12  ;;  %p108_p4 = scmp.eq.s32.totalorder %s430_s17, 1 }
   0x8   : > { %s644_s21 = scalar_select %p89_p1, %s576_s14, %s91_s19  }
   0x9   : > { %p646_p5 = por %p102_p2, %p101_p0  ;;  %p650_p6 = por %p108_p4, %p107_p3 }
   0xa   : > { %p433_p7 = scmp.ge.s32.totalorder %s580_s15, 1  ;;  %p140_p8 = scmp.lt.s32.totalorder %s580_s15, 3 }
   0xc   : > { %p141_p9 = pnand %p433_p7, %p140_p8 }
   0xd   : > { %p164_p10 = scmp.lt.s32.totalorder (!%p141_p9), %s629_s16, 1  ;;  %v582_v0 = vmov (!%p141_p9), 0.0   ;;  %vm583_vm0 = vmmov (!%p141_p9), 0   ;;  %vm194_vm1 = vcmask (!%p141_p9), 1041408   ;;  %s584_s29 = smov (!%p141_p9), 126   ;;  %vm190_vm2 = vcmask (!%p141_p9), 31744  }
   0xe   : > { %144 = sbr.rel (%p141_p9) target bundleno = 388 (0x184), region = 32  ;;  %455 = vmatprep.subr.bf16.mxu0 (!%p141_p9), %v582_v0  ;;  %461 = vmatprep.subr.bf16.mxu1 (!%p141_p9), %v582_v0  ;;  %s585_s30 = smov (!%p141_p9), 127   ;;  %v171_v5 = vld [vmem:[%s730_s1] sm:$0xf] (!%p141_p9)  ;;  %v586_v6 = vmov (!%p141_p9), 0   ;;  %vm300_vm3 = vcmask (!%p141_p9), 1031168  }
   0xf   : > { %457 = vmatprep.mubr.msk.bf16.mxu0 (!%p141_p9), %vm583_vm0, %v582_v0  ;;  %463 = vmatprep.mubr.msk.bf16.mxu1 (!%p141_p9), %vm583_vm0, %v582_v0  ;;  %v349_v7 = vld [vmem:[%s731_s2] sm:$0xff] (!%p141_p9)  ;;  %vm188_vm4 = vcmask (!%p141_p9), 1039360   ;;  %v441_v17 = vld [vmem:[%s730_s1 + $0x8] sm:$0xf] (!%p141_p9)  ;;  %s161_s17 = sand.u32 (!%p141_p9), 1, %s572_s13   ;;  %s445_s20 = sshll.u32 (!%p141_p9), %s629_s16, 7 }
  0x10   : > { %517 = vset.pattern.permute.xlu0 (!%p141_p9), %v586_v6  ;;  %v437_v15 = vld [vmem:[%s730_s1 + $0x4] sm:$0xf] (!%p141_p9)  ;;  %s434_s19 = sshll.u32 (!%p141_p9), %s161_s17, 3 }
  0x15   : > { %s165_s24 = scalar_select %p164_p10, %s629_s16, 1 }
  0x17   : > { %s448_s25 = sshll.u32 %s165_s24, 2  ;;  %s163_s24 = scalar_lea.vmem [#allocation2], %s434_s19 }
  0x18   : > { %s168_s28 = scalar_lea.vmem %s729_s0, %s448_s25  ;;  %s371_s25 = sshll.u32 %s163_s24, 4  ;;  %s689_s25 = int_to_ptr.vmem [resolvable:$true] %s371_s25 }
  0x19   : > { %v442_v1 = vld.sshfl [vmem:[%s168_s28] sm:$0x33 pattern:$0x76325410]  ;;  %s518_s16 = scalar_lea.vmem %s689_s25, 128 }
  0x1a   : > { %v170_v2 = vld [vmem:[%s168_s28] sm:$0x3]  ;;  %296 = vrot.lane.b32.xlu1 %v442_v1, %s584_s29  ;;  %v295_v3 = vcombine.high %v442_v1, %v442_v1  ;;  %184 = vrot.lane.b32.xlu0 %v442_v1, %s585_s30  ;;  %s687_s28 = scalar_lea.hbm %s732_s3, %s445_s20  ;;  %p519_p11 = scmp.ne.s32.totalorder %s689_s25, %s518_s16 }
  0x1b   : > { %v242_v4 = vsel %vm194_vm1, %v170_v2, 0 }
  0x1c   : > { %462 = vmatpush3.bf16.msra.mxu1 %v242_v4  ;;  %p520_p12 = pnand %p519_p11, %p646_p5 }
  0x1e   : > { %298 = vrot.lane.b32.xlu1 %v295_v3, %s584_s29  ;;  %186 = vrot.lane.b32.xlu0 %v295_v3, %s585_s30  ;;  %s358_s29 = scalar_lea.sflag [#allocation3], %s161_s17  ;;  %p521_p13 = pneg %p520_p12 }
  0x1f   : > { %464 = vmatmul.mubr.msk.bf16.vlgmr.msra.gmra.mrb[0].mxu1 %vm190_vm2, %v171_v5  ;;  %s587_s30 = smov [#allocation2]  }
  0x20   : > { %s522_s4 = sshll.u32 %s587_s30, 4  ;;  %s523_s4 = int_to_ptr.vmem [resolvable:$false] %s522_s4 }
  0x21   : > { %s524_s5 = scalar_lea.vmem %s523_s4, 256  ;;  %p525_p0 = scmp.lt.s32.totalorder %s689_s25, %s523_s4 }
  0x22   : > { %352 = vperm.xlu0 %517, %v349_v7   ;;  %p526_p1 = scmp.lt.s32.totalorder %s524_s5, %s518_s16 }
  0x24   : > { %p527_p2 = por %p526_p1, %p525_p0 }
  0x26   : > { %p528_p3 = pnand %p527_p2, %p521_p13 }
  0x8c   : > { %v297_v8 = vpop.permute.xlu1 %296  ;;  %v185_v9 = vpop.permute.xlu0 %184 }
  0x90   : > { %v299_v10 = vpop.permute.xlu1 %298  ;;  %v187_v11 = vpop.permute.xlu0 %186 }
  0x91   : > { %v301_v12 = vsel %vm300_vm3, %v297_v8, %v299_v10  ;;  %v189_v13 = vsel %vm188_vm4, %v185_v9, %v187_v11 }
  0x92   : > { %v196_v14 = vsel %vm194_vm1, %v189_v13, 0  ;;  %v306_v16 = vsel %vm194_vm1, %v301_v12, 0 }
  0x93   : > { %456 = vmatpush3.bf16.msra.mxu0 %v196_v14 }
  0x94   : > { %467 = vmatprep.subr.bf16.mxu0 %v582_v0 }
  0x96   : > { %458 = vmatmul.mubr.msk.bf16.vlgmr.msra.gmra.mrb[0].mxu0 %vm190_vm2, %v437_v15 }
  0x97   : > { %468 = vmatpush3.bf16.msra.mxu0 %v306_v16  ;;  %469 = vmatprep.mubr.msk.bf16.mxu0 %vm583_vm0, %v582_v0 }
  0x9e   : > { %470 = vmatmul.mubr.msk.bf16.vlgmr.msra.gmra.mrb[4].mxu0 %vm190_vm2, %v441_v17 }
  0xa1   : > { %v353_v28 = vpop.permute.xlu0 %352 }
  0xf2   : > { %v278_v18 = vpop.f32.mrb[0].mxu1 }
  0xf3   : > { %v465_v19 = vpop.f32.mrb[1].mxu1 }
  0xf4   : > { %v281_v20 = vpop.f32.mrb[2].mxu1 }
  0xf5   : > { %v466_v21 = vpop.f32.mrb[3].mxu1 }
 0x169   : > { %v232_v22 = vpop.f32.mrb[0].mxu0 }
 0x16a   : > { %v459_v23 = vpop.f32.mrb[1].mxu0  ;;  %v279_v24 = vadd.f32 %v278_v18, %v232_v22 }
 0x16b   : > { %v235_v25 = vpop.f32.mrb[2].mxu0 }
 0x16c   : > { %v460_v26 = vpop.f32.mrb[3].mxu0 }
 0x171   : > { %v342_v27 = vpop.f32.mrb[4].mxu0 }
 0x172   : > { %v348_v29 = vadd.f32 %v342_v27, %v279_v24  ;;  %v471_v30 = vpop.f32.mrb[5].mxu0 }
 0x173   : > { %v345_v31 = vpop.f32.mrb[6].mxu0 }
 0x174   : > { %v355_v32 = vadd.f32 %v353_v28, %v348_v29  ;;  %v472_v33 = vpop.f32.mrb[7].mxu0 }
 0x176   : > { %356 = vst [vmem:[%s163_s24] sm:$0xff] %v355_v32 }
 0x177   : > { %531 = shalt.err (!%p528_p3)
}
 0x178   : > { %s532_s6 = scalar_lea.hbm %s687_s28, 128  ;;  %s536_s9 = scalar_lea.hbm %s732_s3, 256 }
 0x179   : > { %p533_p4 = scmp.ne.s32.totalorder %s687_s28, %s532_s6  ;;  %p537_p9 = scmp.lt.u32.totalorder %s687_s28, %s732_s3 }
 0x17a   : > { %p538_p10 = scmp.lt.u32.totalorder %s536_s9, %s532_s6  ;;  %p540_p12 = scmp.lt.u32.totalorder %s532_s6, %s687_s28 }
 0x17b   : > { %p534_p7 = pnand %p533_p4, %p646_p5 }
 0x17c   : > { %p539_p11 = por %p538_p10, %p537_p9 }
 0x17d   : > { %p535_p8 = pneg %p534_p7 }
 0x17e   : > { %p541_p13 = por %p540_p12, %p539_p11 }
 0x180   : > { %p542_p0 = pnand %p541_p13, %p535_p8 }
 0x182   : > { %545 = shalt.err (!%p542_p0)
}
 0x183   : > { %473 = dma.vmem_to_hbm [thread:$0]  (%p646_p5), %s689_s25, 128, %s687_s28, %s358_s29  }
 0x184 PF: > { %p479_p1 = scmp.ge.s32.totalorder %s580_s15, 2  ;;  %s383_s17 = sand.u32 1, %s568_s12  }
 0x185   : > { %s384_s19 = scalar_lea.sflag [#allocation3], %s383_s17 }
 0x186   : > { %p476_p2 = pnand %p479_p1, %p650_p6 }
 0x188   : > { %563 = dma.done.wait (!%p476_p2), %s384_s19, 128  }
 0x189   : > { %565 = vsyncadd (!%p476_p2), %s384_s19, 4294967168  ;;  %p13_p3 = scmp.ge.s32.totalorder %s633_s18, 4   ;;  %s735_s12 = smov %s572_s13 }
 0x18a   : > { %s736_s13 = smov %s576_s14  ;;  %s737_s14 = smov %s644_s21 }
 0x18b   : > { %s738_s15 = smov %s633_s18  ;;  %15 = sbr.rel (!%p13_p3) target bundleno = 3 (0x3), region = 69 }
 0x192   :  { %389 = vsyncpa [#allocation3], 1 }
 0x193   :  { %391 = vsyncpa [#allocation3 + $0x1], 1 }

</bundles_post_ra>
